<compile_context>
chip_gen: v7x
topology: tpu7x:2x2x1
jax: 0.10.0
libtpu: 0.0.40
codegen_flags: <defaults>
</compile_context>

<pallas_src>
import functools

import jax
import jax.numpy as jnp
from jax.experimental import pallas as pl
from jax.experimental.pallas import tpu as pltpu


# --------------------------------------------------------------------------------------
# Kernel
# --------------------------------------------------------------------------------------
def _depthwise_conv3(x, taps, seq_len):
    """Depthwise k=3, pad=1 conv along the sequence axis of batch-major rows.

    x:    (TR, C) f32, rows ordered (batch, seq) with TR a multiple of seq_len.
    taps: (3, C)  f32, taps[k, c] = conv_weight[c, 0, k].
    """
    rows = x.shape[0]
    pos = jax.lax.broadcasted_iota(jnp.int32, x.shape, 0) % seq_len
    # Shift rows on the XLU; zero the wrapped rows (== PyTorch zero padding).  Tiles are
    # batch-aligned, so masking pos==0 / pos==seq_len-1 also kills cross-sequence bleed.
    x_prev = jnp.where(pos == 0, 0.0, pltpu.roll(x, shift=1, axis=0))
    x_next = jnp.where(pos == seq_len - 1, 0.0, pltpu.roll(x, shift=rows - 1, axis=0))
    return taps[0:1, :] * x_prev + taps[1:2, :] * x + taps[2:3, :] * x_next


def _mkan_kernel(x_ref, coeff_ref, bias_ref, tap_ref, o_ref, *, deg_p1, seq_len, fused):
    """Fused ChebyKAN channel mixer + depthwise k=3 conv + add, on one row tile.

    x_ref:     (TR, C)                input rows (TR = TB * seq_len, batch-major)
    coeff_ref: (order*C, C)  bf16     fused coeff layout  (fused=True), or
               (deg_p1, C, C) bf16    per-degree layout   (fused=False)
    bias_ref:  (1, C) f32             precomputed T_0 bias (f32 column sums of coeff[.,.,0])
    tap_ref:   (3, C) f32             depthwise conv taps
    o_ref:     (TR, C)                output rows
    """
    x = x_ref[...].astype(jnp.float32)                    # (TR, C)
    t = jnp.tanh(x)                                       # Chebyshev argument, in (-1, 1)

    if deg_p1 <= 1:
        # Order 0: the channel mixer is just the precomputed per-channel bias.
        x1 = bias_ref[...]
    elif fused:
        # One MXU launch: phi = [T_1 | T_2 | ... | T_order]  -> (TR, order*C), bf16.
        cheb = [jnp.ones_like(t), t]
        for _ in range(2, deg_p1):                        # T_{k+1} = 2 t T_k - T_{k-1}
            cheb.append(2.0 * t * cheb[-1] - cheb[-2])
        phi = jnp.concatenate(cheb[1:], axis=-1).astype(jnp.bfloat16)
        x1 = jnp.dot(phi, coeff_ref[...],
                     preferred_element_type=jnp.float32) + bias_ref[...]
    else:
        # Per-degree accumulation (each dot already has K = C >= 128).
        acc = None
        tk_m1, tk = jnp.ones_like(t), t
        for k in range(1, deg_p1):                        # short static unroll
            contrib = jnp.dot(tk.astype(jnp.bfloat16), coeff_ref[k],
                              preferred_element_type=jnp.float32)
            acc = contrib if acc is None else acc + contrib
            if k + 1 < deg_p1:
                tk, tk_m1 = 2.0 * t * tk - tk_m1, tk
        x1 = acc + bias_ref[...]

    x2 = _depthwise_conv3(x, tap_ref[...], seq_len)
    o_ref[...] = (x1 + x2).astype(o_ref.dtype)


# --------------------------------------------------------------------------------------
# Parameter packing (one-time, at load time — not on the per-call path)
# --------------------------------------------------------------------------------------
def prepare_mkan_params(cheby_coeffs, conv_weight, *, fuse=None):
    """Repack PyTorch-layout weights for the kernel.

    cheby_coeffs: (C_in, C_out, order+1)   ChebyKANLinear coefficient layout
    conv_weight:  (C_out, 1, 3)            PyTorch depthwise Conv1d layout
    fuse: force fused (single-matmul) coeff layout; default: fuse iff C_in < 128.
    """
    c_in, c_out, deg_p1 = cheby_coeffs.shape
    fuse = (c_in < 128) if fuse is None else bool(fuse)
    fuse = fuse and deg_p1 > 1

    taps = jnp.transpose(conv_weight[:, 0, :], (1, 0)).astype(jnp.float32)        # (3, C)
    # T_0 == 1 contribution: per-output-channel bias, kept in f32 for accuracy.
    bias = jnp.sum(cheby_coeffs[:, :, 0].astype(jnp.float32), axis=0, keepdims=True)  # (1, C)

    coeff_dio = jnp.transpose(cheby_coeffs, (2, 0, 1))                             # (deg, in, out)
    if fuse:
        coeff = coeff_dio[1:].reshape((deg_p1 - 1) * c_in, c_out).astype(jnp.bfloat16)
    else:
        coeff = coeff_dio.astype(jnp.bfloat16)

    return dict(coeff=coeff, bias=bias, taps=taps, deg_p1=int(deg_p1), fused=bool(fuse))


# --------------------------------------------------------------------------------------
# Tiling / VMEM sizing helpers
# --------------------------------------------------------------------------------------
def _tpu_vmem_capacity_bytes():
    try:
        return int(pltpu.get_tpu_info().vmem_capacity_bytes)
    except Exception:  # conservative fallback (v5e/v6e physical VMEM)
        return 128 << 20


def _pick_block_b(batch, seq_len, channels, itemsize, tile_budget_bytes, min_grid=4):
    """Pick a batch tile TB that divides B, keeps TB*N sublane-aligned, stays under the
    tile byte budget, and (preferably) yields an even grid of >= min_grid steps."""
    row_bytes = max(seq_len * channels * itemsize, 1)
    max_tb = max(1, tile_budget_bytes // row_bytes)

    def _search(pred):
        for tb in range(min(batch, max_tb), 0, -1):
            if batch % tb == 0 and (tb * seq_len) % 8 == 0 and pred(batch // tb):
                return tb
        return None

    tb = _search(lambda g: g >= min_grid and g % 2 == 0)   # even, >=4 steps (dual-TC + pipeline)
    if tb is None:
        tb = _search(lambda g: g >= 2)                     # at least some prefetch overlap
    if tb is None:
        tb = _search(lambda g: True)
    # Fallback: full-array block (grid=(1,)) — correct, but disables pipelining / dual-TC.
    return batch if tb is None else tb


# --------------------------------------------------------------------------------------
# Forward
# --------------------------------------------------------------------------------------
@functools.partial(jax.jit, static_argnames=("deg_p1", "fused", "block_b"))
def _m_kan_impl(x, coeff, bias, taps, *, deg_p1, fused, block_b=None):
    B, N, C = x.shape
    itemsize = x.dtype.itemsize
    weight_bytes = (coeff.size * coeff.dtype.itemsize
                    + bias.size * bias.dtype.itemsize
                    + taps.size * taps.dtype.itemsize)

    # Generation-aware budgets: keep 16x input tile + 4x weights under 75% of physical VMEM
    # (v7x only has 64 MiB), with a hard 4 MiB per-tile cap.
    usable_vmem = int(_tpu_vmem_capacity_bytes() * 0.75)
    tile_budget = int(max(256 << 10, min(4 << 20, (usable_vmem - 4 * weight_bytes) // 16)))

    tb = _pick_block_b(B, N, C, itemsize, tile_budget) if block_b is None else block_b
    assert B % tb == 0, "block_b must divide the batch size"
    assert (tb * N) % 8 == 0 or tb == B, "batch tile must be sublane-aligned (tb*N % 8 == 0)"
    rows = tb * N
    grid = (B // tb,)

    x2d = x.reshape(B * N, C)                              # layout-trivial merge of leading dims
    tile_bytes = rows * C * itemsize
    vmem_limit = int(min(usable_vmem, max(32 << 20, 16 * tile_bytes + 4 * weight_bytes)))

    order = max(deg_p1 - 1, 0)
    cost = pl.CostEstimate(
        flops=2 * B * N * C * C * order + 10 * B * N * C,
        transcendentals=B * N * C,                         # tanh
        bytes_accessed=2 * x.size * itemsize + weight_bytes,
    )

    if fused:
        coeff_spec = pl.BlockSpec(coeff.shape, lambda i: (0, 0))        # resident (order*C, C)
    else:
        coeff_spec = pl.BlockSpec(coeff.shape, lambda i: (0, 0, 0))     # resident (deg, C, C)

    kernel = functools.partial(_mkan_kernel, deg_p1=deg_p1, seq_len=N, fused=fused)
    out2d = pl.pallas_call(
        kernel,
        out_shape=jax.ShapeDtypeStruct((B * N, C), x.dtype),
        grid=grid,
        in_specs=[
            pl.BlockSpec((rows, C), lambda i: (i, 0)),     # streamed activation rows
            coeff_spec,                                    # resident bf16 Chebyshev coeffs
            pl.BlockSpec((1, C), lambda i: (0, 0)),        # resident f32 T_0 bias
            pl.BlockSpec((3, C), lambda i: (0, 0)),        # resident f32 conv taps
        ],
        out_specs=pl.BlockSpec((rows, C), lambda i: (i, 0)),
        compiler_params=pltpu.CompilerParams(
            dimension_semantics=("parallel",),
            vmem_limit_bytes=vmem_limit,
        ),
        cost_estimate=cost,
    )(x2d, coeff, bias, taps)
    return out2d.reshape(B, N, C)


def m_kan_forward(x, params, *, block_b=None):
    """x: (B, N, C); params: output of prepare_mkan_params. Output dtype == input dtype."""
    return _m_kan_impl(x, params["coeff"], params["bias"], params["taps"],
                       deg_p1=params["deg_p1"], fused=params["fused"], block_b=block_b)


# --------------------------------------------------------------------------------------
# Pure-JAX reference (mirrors the PyTorch module, f32, acos/cos formulation)
# --------------------------------------------------------------------------------------
def _reference_forward(x, cheby_coeffs, conv_weight):
    B, N, C = x.shape
    deg_p1 = cheby_coeffs.shape[-1]
    t = jnp.tanh(x.reshape(B * N, C).astype(jnp.float32))
    theta = jnp.arccos(jnp.clip(t, -1.0, 1.0))
    basis = jnp.cos(theta[:, :, None] * jnp.arange(deg_p1, dtype=jnp.float32))
    x1 = jnp.einsum("bid,iod->bo", basis, cheby_coeffs.astype(jnp.float32)).reshape(B, N, C)

    w = conv_weight[:, 0, :].astype(jnp.float32)           # (C, 3)
    xp = jnp.pad(x.astype(jnp.float32), ((0, 0), (1, 1), (0, 0)))
    x2 = (w[:, 0][None, None, :] * xp[:, :-2]
          + w[:, 1][None, None, :] * xp[:, 1:-1]
          + w[:, 2][None, None, :] * xp[:, 2:])
    return x1 + x2


if __name__ == "__main__":
    # M_KAN(d_model=32, seq_len=8, order=3); input x: (B=4, N=seq_len=8, C=d_model=32)
    B, N, C, order = 4, 8, 32, 3
    deg_p1 = order + 1

    key = jax.random.PRNGKey(0)
    kx, kc, kw = jax.random.split(key, 3)

    x = jax.random.normal(kx, (B, N, C), dtype=jnp.float32)
    # ChebyKANLinear-style coeffs, shape (in, out, degree+1)
    cheby_coeffs = jax.random.normal(kc, (C, C, deg_p1), dtype=jnp.float32) / (C * deg_p1)
    # Depthwise Conv1d weight, PyTorch shape (C_out, C_in/groups=1, kernel=3)
    bound = 1.0 / (3.0 ** 0.5)
    conv_weight = jax.random.uniform(kw, (C, 1, 3), dtype=jnp.float32,
                                     minval=-bound, maxval=bound)

    ref = _reference_forward(x, cheby_coeffs, conv_weight)

    # Fused single-matmul path (C < 128); auto tiling -> tb=1, grid=(4,), weights resident.
    params_fused = prepare_mkan_params(cheby_coeffs, conv_weight)
    out_fused = jax.block_until_ready(m_kan_forward(x, params_fused))
    assert out_fused.shape == (B, N, C)
    # bf16 MXU operands (f32 accumulation) -> slightly looser tolerance than pure f32.
    assert jnp.allclose(out_fused, ref, atol=1e-2, rtol=1e-2), "fused path mismatch vs reference"

    # Per-degree fallback path (used for C >= 128 in production), exercised here for coverage.
    params_loop = prepare_mkan_params(cheby_coeffs, conv_weight, fuse=False)
    out_loop = jax.block_until_ready(m_kan_forward(x, params_loop, block_b=2))
    assert jnp.allclose(out_loop, ref, atol=1e-2, rtol=1e-2), "degree-loop path mismatch vs reference"

    print("KERNEL_OK")
</pallas_src>

<mosaic_0001>
module attributes {stable_mosaic.version = 11 : i64} {
  func.func @_mkan_kernel(%arg0: i32, %arg1: memref<8x32xf32, #tpu.memory_space<vmem>>, %arg2: memref<96x32xbf16, #tpu.memory_space<vmem>>, %arg3: memref<1x32xf32, #tpu.memory_space<vmem>>, %arg4: memref<3x32xf32, #tpu.memory_space<vmem>>, %arg5: memref<8x32xf32, #tpu.memory_space<vmem>>) attributes {dimension_semantics = [#tpu.dimension_semantics<parallel>], iteration_bounds = array<i64: 4>, scalar_prefetch = 0 : i64, scratch_operands = 0 : i64, tpu.core_type = #tpu.core_type<tc>, window_params = [{transform_indices = @transform_0, window_bounds = array<i64: 8, 32>}, {pipeline_mode = #tpu.pipeline_mode<synchronous>, transform_indices = @transform_1, window_bounds = array<i64: 96, 32>}, {pipeline_mode = #tpu.pipeline_mode<synchronous>, transform_indices = @transform_2, window_bounds = array<i64: 1, 32>}, {pipeline_mode = #tpu.pipeline_mode<synchronous>, transform_indices = @transform_3, window_bounds = array<i64: 3, 32>}, {transform_indices = @transform_4, window_bounds = array<i64: 8, 32>}]} {
    %c0 = arith.constant 0 : index
    %c0_0 = arith.constant 0 : index
    %0 = vector.load %arg1[%c0, %c0_0] : memref<8x32xf32, #tpu.memory_space<vmem>>, vector<8x32xf32>
    %1 = math.tanh %0 : vector<8x32xf32>
    %cst = arith.constant 1.000000e+00 : f32
    %2 = vector.broadcast %cst : f32 to vector<8x32xf32>
    %cst_1 = arith.constant 2.000000e+00 : f32
    %3 = vector.broadcast %cst_1 : f32 to vector<8x32xf32>
    %4 = arith.mulf %3, %1 : vector<8x32xf32>
    %5 = arith.mulf %4, %1 : vector<8x32xf32>
    %6 = arith.subf %5, %2 : vector<8x32xf32>
    %cst_2 = arith.constant 2.000000e+00 : f32
    %7 = vector.broadcast %cst_2 : f32 to vector<8x32xf32>
    %8 = arith.mulf %7, %1 : vector<8x32xf32>
    %9 = arith.mulf %8, %6 : vector<8x32xf32>
    %10 = arith.subf %9, %1 : vector<8x32xf32>
    %11 = tpu.concatenate %1, %6, %10 in 1 : vector<8x32xf32>, vector<8x32xf32>, vector<8x32xf32> -> vector<8x96xf32>
    %12 = arith.truncf %11 : vector<8x96xf32> to vector<8x96xbf16>
    %c0_3 = arith.constant 0 : index
    %c0_4 = arith.constant 0 : index
    %13 = vector.load %arg2[%c0_3, %c0_4] : memref<96x32xbf16, #tpu.memory_space<vmem>>, vector<96x32xbf16>
    %cst_5 = arith.constant dense<0.000000e+00> : vector<8x32xf32>
    %14 = tpu.matmul %12, %13, %cst_5 {dimension_numbers = #tpu.dot_dimension_numbers<[1], [0], [0], [1], [0, 0, 1, 1], [], []>} : vector<8x96xbf16>, vector<96x32xbf16>, vector<8x32xf32> -> vector<8x32xf32>
    %c0_6 = arith.constant 0 : index
    %c0_7 = arith.constant 0 : index
    %15 = vector.load %arg3[%c0_6, %c0_7] : memref<1x32xf32, #tpu.memory_space<vmem>>, vector<1x32xf32>
    %16 = vector.broadcast %15 : vector<1x32xf32> to vector<8x32xf32>
    %17 = arith.addf %14, %16 : vector<8x32xf32>
    %c0_8 = arith.constant 0 : index
    %c0_9 = arith.constant 0 : index
    %18 = vector.load %arg4[%c0_8, %c0_9] : memref<3x32xf32, #tpu.memory_space<vmem>>, vector<3x32xf32>
    %19 = tpu.iota {dimensions = array<i32: 0>} : vector<8x32xi32>
    %c8_i32 = arith.constant 8 : i32
    %c0_i32 = arith.constant 0 : i32
    %20 = arith.cmpi eq, %c8_i32, %c0_i32 : i32
    %c1_i32 = arith.constant 1 : i32
    %21 = arith.select %20, %c1_i32, %c8_i32 : i32
    %22 = vector.broadcast %21 : i32 to vector<8x32xi32>
    %23 = arith.remsi %19, %22 : vector<8x32xi32>
    %c0_i32_10 = arith.constant 0 : i32
    %24 = vector.broadcast %c0_i32_10 : i32 to vector<8x32xi32>
    %25 = arith.cmpi ne, %23, %24 : vector<8x32xi32>
    %c0_i32_11 = arith.constant 0 : i32
    %26 = vector.broadcast %c0_i32_11 : i32 to vector<8x32xi32>
    %27 = arith.cmpi slt, %23, %26 : vector<8x32xi32>
    %c0_i32_12 = arith.constant 0 : i32
    %28 = arith.cmpi slt, %21, %c0_i32_12 : i32
    %29 = vector.broadcast %28 : i1 to vector<8x32xi1>
    %30 = vector.broadcast %29 : vector<8x32xi1> to vector<8x32xi1>
    %31 = arith.xori %27, %30 : vector<8x32xi1>
    %32 = arith.andi %31, %25 : vector<8x32xi1>
    %33 = vector.broadcast %21 : i32 to vector<8x32xi32>
    %34 = arith.addi %23, %33 : vector<8x32xi32>
    %35 = arith.select %32, %34, %23 : vector<8x32xi1>, vector<8x32xi32>
    %c0_i32_13 = arith.constant 0 : i32
    %36 = vector.broadcast %c0_i32_13 : i32 to vector<8x32xi32>
    %37 = arith.cmpi eq, %35, %36 : vector<8x32xi32>
    %c1_i32_14 = arith.constant 1 : i32
    %38 = tpu.dynamic_rotate %0 by %c1_i32_14 dim 0 : vector<8x32xf32>, i32 -> vector<8x32xf32>
    %cst_15 = arith.constant 0.000000e+00 : f32
    %39 = vector.broadcast %cst_15 : f32 to vector<8x32xf32>
    %40 = arith.select %37, %39, %38 : vector<8x32xi1>, vector<8x32xf32>
    %c7_i32 = arith.constant 7 : i32
    %41 = vector.broadcast %c7_i32 : i32 to vector<8x32xi32>
    %42 = arith.cmpi eq, %35, %41 : vector<8x32xi32>
    %c7_i32_16 = arith.constant 7 : i32
    %43 = tpu.dynamic_rotate %0 by %c7_i32_16 dim 0 : vector<8x32xf32>, i32 -> vector<8x32xf32>
    %cst_17 = arith.constant 0.000000e+00 : f32
    %44 = vector.broadcast %cst_17 : f32 to vector<8x32xf32>
    %45 = arith.select %42, %44, %43 : vector<8x32xi1>, vector<8x32xf32>
    %46 = vector.extract_strided_slice %18 {offsets = [0, 0], sizes = [1, 32], strides = [1, 1]} : vector<3x32xf32> to vector<1x32xf32>
    %47 = vector.broadcast %46 : vector<1x32xf32> to vector<8x32xf32>
    %48 = arith.mulf %47, %40 : vector<8x32xf32>
    %49 = vector.extract_strided_slice %18 {offsets = [1, 0], sizes = [1, 32], strides = [1, 1]} : vector<3x32xf32> to vector<1x32xf32>
    %50 = vector.broadcast %49 : vector<1x32xf32> to vector<8x32xf32>
    %51 = arith.mulf %50, %0 : vector<8x32xf32>
    %52 = arith.addf %48, %51 : vector<8x32xf32>
    %53 = vector.extract_strided_slice %18 {offsets = [2, 0], sizes = [1, 32], strides = [1, 1]} : vector<3x32xf32> to vector<1x32xf32>
    %54 = vector.broadcast %53 : vector<1x32xf32> to vector<8x32xf32>
    %55 = arith.mulf %54, %45 : vector<8x32xf32>
    %56 = arith.addf %52, %55 : vector<8x32xf32>
    %57 = arith.addf %17, %56 : vector<8x32xf32>
    %c0_18 = arith.constant 0 : index
    %c0_19 = arith.constant 0 : index
    %58 = vector.load %arg5[%c0_18, %c0_19] : memref<8x32xf32, #tpu.memory_space<vmem>>, vector<8x32xf32>
    tpu.vector_store %arg5[%c0_18, %c0_19], %57 {strides = array<i32>} : memref<8x32xf32, #tpu.memory_space<vmem>>, vector<8x32xf32>,
    return
  }
  func.func @transform_0(%arg0: i32) -> (i32, i32) {
    %c0_i32 = arith.constant 0 : i32
    %c0_i32_0 = arith.constant 0 : i32
    return %arg0, %c0_i32 : i32, i32
  }
  func.func @transform_1(%arg0: i32) -> (i32, i32) {
    %c0_i32 = arith.constant 0 : i32
    %c0_i32_0 = arith.constant 0 : i32
    %c0_i32_1 = arith.constant 0 : i32
    return %c0_i32, %c0_i32_0 : i32, i32
  }
  func.func @transform_2(%arg0: i32) -> (i32, i32) {
    %c0_i32 = arith.constant 0 : i32
    %c0_i32_0 = arith.constant 0 : i32
    %c0_i32_1 = arith.constant 0 : i32
    return %c0_i32, %c0_i32_0 : i32, i32
  }
  func.func @transform_3(%arg0: i32) -> (i32, i32) {
    %c0_i32 = arith.constant 0 : i32
    %c0_i32_0 = arith.constant 0 : i32
    %c0_i32_1 = arith.constant 0 : i32
    return %c0_i32, %c0_i32_0 : i32, i32
  }
  func.func @transform_4(%arg0: i32) -> (i32, i32) {
    %c0_i32 = arith.constant 0 : i32
    %c0_i32_0 = arith.constant 0 : i32
    return %arg0, %c0_i32 : i32, i32
  }
}

</mosaic_0001>

<bundles_post_ra>
// kernel: _m_kan_impl.1
= control target key start
LH: loop header
LB: loop body
LE: loop exit
PB: predicated region body
PF: predicated region fallthrough
CT: control target
= control target key end

     0   :  { %9 = vsyncpa [#allocation3], 0  ;;  %s739_s0 = inlined_call_operand.vmem [shape: f32[32,32], index: 0, kind: input, shape index: {}]   ;;  %s740_s1 = inlined_call_operand.vmem [shape: bf16[96,32], index: 1, kind: input, shape index: {}]   ;;  %s741_s2 = inlined_call_operand.vmem [shape: f32[1,32], index: 2, kind: input, shape index: {}]   ;;  %s742_s3 = inlined_call_operand.vmem [shape: f32[3,32], index: 3, kind: input, shape index: {}]   ;;  %s743_s4 = inlined_call_operand.hbm [shape: f32[32,32], index: 4, kind: output, shape index: {}]  }
   0x1   :  { %11 = vsyncpa [#allocation3 + $0x1], 0  ;;  %s613_s15 = smov 0   ;;  %s615_s16 = smov 0  }
   0x2   :  { %s617_s17 = smov 0   ;;  %s619_s18 = smov 0  }
   0x3 LB: > { %s634_s19 = sadd.s32 4294967295, %s581_s18   ;;  %s426_s20 = sadd.s32 4294967294, %s581_s18   ;;  %s581_s18 = sphi %s619_s18, %s749_s18   ;;  %s577_s17 = sphi %s617_s17, %s748_s17   ;;  %s573_s16 = sphi %s615_s16, %s747_s16   ;;  %s569_s15 = sphi %s613_s15, %s746_s15  }
   0x4   : > { %s638_s21 = sadd.s32 1, %s581_s18   ;;  %s113_s22 = sadd.s32 1, %s577_s17 }
   0x5   : > { %s110_s23 = ssub.s32 %s581_s18, %s638_s21  ;;  %p123_p0 = scmp.ne.s32.totalorder %s577_s17, %s573_s16 }
   0x6   : > { %p111_p1 = scmp.eq.s32.totalorder %s110_s23, 0  ;;  %p124_p2 = scmp.eq.s32.totalorder %s634_s19, 3 }
   0x7   : > { %p129_p3 = scmp.ne.s32.totalorder %s573_s16, %s569_s15  ;;  %p130_p4 = scmp.eq.s32.totalorder %s426_s20, 3 }
   0x8   : > { %s649_s24 = scalar_select %p111_p1, %s577_s17, %s113_s22  }
   0x9   : > { %p651_p5 = por %p124_p2, %p123_p0  ;;  %p655_p6 = por %p130_p4, %p129_p3 }
   0xa   : > { %p429_p7 = scmp.ge.s32.totalorder %s581_s18, 1  ;;  %p164_p8 = scmp.lt.s32.totalorder %s581_s18, 5 }
   0xc   : > { %p165_p9 = pnand %p429_p7, %p164_p8 }
   0xd   : > { %p189_p10 = scmp.lt.s32.totalorder (!%p165_p9), %s634_s19, 3  ;;  %v511_v0 = vld [vmem:[%s740_s1] sm:$0xff] (!%p165_p9)   ;;  %v583_v1 = vmov (!%p165_p9), 0.0   ;;  %v512_v2 = vld [vmem:[%s740_s1 + $0x8] sm:$0xff] (!%p165_p9)   ;;  %v513_v4 = vld [vmem:[%s740_s1 + $0x10] sm:$0xff] (!%p165_p9)   ;;  %vm584_vm0 = vmmov (!%p165_p9), 0   ;;  %v314_v19 = vlaneseq (!%p165_p9) }
   0xe   : > { %168 = sbr.rel (%p165_p9) target bundleno = 395 (0x18b), region = 36  ;;  %452 = vmatprep.subr.bf16.mxu0 (!%p165_p9), %v583_v1  ;;  %v514_v5 = vld [vmem:[%s740_s1 + $0x18] sm:$0xff] (!%p165_p9)   ;;  %v515_v6 = vld [vmem:[%s740_s1 + $0x20] sm:$0xff] (!%p165_p9)   ;;  %464 = vmatprep.mubr.msk.bf16.mxu0 (!%p165_p9), %vm584_vm0, %v583_v1  ;;  %v516_v9 = vld [vmem:[%s740_s1 + $0x28] sm:$0xff] (!%p165_p9)   ;;  %s585_s27 = smov (!%p165_p9), 32   ;;  %vm209_vm1 = vcmask (!%p165_p9), 261120  }
   0xf   : > { %453 = vmatpush3.bf16.msra.mxu0 (!%p165_p9), %v511_v0  ;;  %s586_s28 = smov (!%p165_p9), 64   ;;  %vm211_vm2 = vcmask (!%p165_p9), 523264   ;;  %vm269_vm3 = vcmask (!%p165_p9), 785408   ;;  %v315_v20 = vshrl.u32 (!%p165_p9), %v314_v19, 7  ;;  %v313_v24 = vld [vmem:[%s742_s3] sm:$0x7] (!%p165_p9) }
  0x10   : > { %454 = vmatprep.subr.bf16.mxu0 (!%p165_p9), %v583_v1  ;;  %s186_s5 = sand.u32 (!%p165_p9), 1, %s573_s16   ;;  %v433_v37 = vld [vmem:[%s741_s2] ss:$0 sm:$0xff] (!%p165_p9)  ;;  %s587_s22 = smov (!%p165_p9), [#allocation2]  }
  0x11   : > { %v320_v21 = vand.u32 (!%p165_p9), 7, %v315_v20  ;;  %v336_v22 = vsub.s32 (!%p165_p9), 0, %v315_v20  ;;  %v341_v23 = vsub.s32 (!%p165_p9), 1, %v315_v20  ;;  %v347_v28 = vsub.s32 (!%p165_p9), 2, %v315_v20  ;;  %s523_s23 = sshll.u32 (!%p165_p9), %s587_s22, 4  ;;  %s524_s23 = int_to_ptr.vmem [resolvable:$false] %s523_s23 }
  0x13   : > { %455 = vmatpush3.bf16.msra.mxu0 (!%p165_p9), %v512_v2  ;;  %vm328_vm4 = vcmp.eq.s32.totalorder (!%p165_p9), %v320_v21, 0  ;;  %v337_v26 = vrot.slane (!%p165_p9), %v313_v24, %v336_v22  ;;  %v342_v27 = vrot.slane (!%p165_p9), %v313_v24, %v341_v23  ;;  %vm331_vm5 = vcmp.eq.s32.totalorder (!%p165_p9), %v320_v21, 7 }
  0x14   : > { %456 = vmatprep.subr.bf16.mxu0 (!%p165_p9), %v583_v1  ;;  %v348_v33 = vrot.slane (!%p165_p9), %v313_v24, %v347_v28 }
  0x15   : > { %s190_s29 = scalar_select %p189_p10, %s634_s19, 3 }
  0x17   : > { %s431_s6 = sshll.u32 %s190_s29, 3  ;;  %457 = vmatpush3.bf16.msra.mxu0 %v513_v4 }
  0x18   : > { %s192_s9 = scalar_lea.vmem %s739_s0, %s431_s6  ;;  %458 = vmatprep.subr.bf16.mxu0 %v583_v1  ;;  %s430_s6 = sshll.u32 %s186_s5, 3 }
  0x19   : > { %v194_v3 = vld [vmem:[%s192_s9] sm:$0xff]  ;;  %s442_s9 = sshll.u32 %s634_s19, 7  ;;  %s188_s10 = scalar_lea.vmem [#allocation2], %s430_s6 }
  0x1a   : > { %517 = vtanh.f32 %v194_v3  ;;  %v329_v25 = vrot.slane %v194_v3, 7  ;;  %v332_v30 = vrot.slane %v194_v3, 1  ;;  %v343_v32 = vmul.f32 %v342_v27, %v194_v3  ;;  %s367_s11 = sshll.u32 %s188_s10, 4  ;;  %s696_s14 = scalar_lea.hbm %s743_s4, %s442_s9  ;;  %s698_s11 = int_to_ptr.vmem [resolvable:$true] %s367_s11 }
  0x1b   : > { %459 = vmatpush3.bf16.msra.mxu0 %v514_v5  ;;  %s354_s19 = scalar_lea.sflag [#allocation3], %s186_s5  ;;  %s519_s20 = scalar_lea.vmem %s698_s11, 128 }
  0x1c   : > { %460 = vmatprep.subr.bf16.mxu0 %v583_v1  ;;  %v330_v29 = vsel %vm328_vm4, 0.0, %v329_v25  ;;  %v333_v34 = vsel %vm331_vm5, 0.0, %v332_v30  ;;  %p520_p11 = scmp.ne.s32.totalorder %s698_s11, %s519_s20  ;;  %p526_p0 = scmp.lt.s32.totalorder %s698_s11, %s524_s23 }
  0x1d   : > { %v338_v31 = vmul.f32 %v337_v26, %v330_v29  ;;  %v349_v36 = vmul.f32 %v348_v33, %v333_v34 }
  0x1e   : > { %p521_p12 = pnand %p520_p11, %p651_p5 }
  0x1f   : > { %461 = vmatpush3.bf16.msra.mxu0 %v515_v6  ;;  %v344_v35 = vadd.f32 %v343_v32, %v338_v31 }
  0x20   : > { %462 = vmatprep.subr.bf16.mxu0 %v583_v1  ;;  %p522_p13 = pneg %p521_p12 }
  0x21   : > { %v350_v38 = vadd.f32 %v349_v36, %v344_v35 }
  0x23   : > { %463 = vmatpush3.bf16.msra.mxu0 %v516_v9 }
  0x24   : > { %v518_v7 = vpop.eup %517 }
  0x25   : > { %v196_v8 = vmul.f32 2.0, %v518_v7 }
  0x27   : > { %v197_v10 = vmul.f32 %v518_v7, %v196_v8 }
  0x29   : > { %v432_v11 = vadd.f32 -1.0, %v197_v10 }
  0x2b   : > { %202 = vrot.lane.b32.xlu0 %v432_v11, %s585_s27  ;;  %v199_v12 = vmul.f32 %v432_v11, %v196_v8  ;;  %s525_s27 = scalar_lea.vmem %s524_s23, 256 }
  0x2c   : > { %p527_p1 = scmp.lt.s32.totalorder %s525_s27, %s519_s20 }
  0x2d   : > { %v200_v13 = vsub.f32 %v199_v12, %v518_v7 }
  0x2e   : > { %p528_p2 = por %p527_p1, %p526_p0 }
  0x2f   : > { %206 = vrot.lane.b32.xlu0 %v200_v13, %s586_s28 }
  0x30   : > { %p529_p3 = pnand %p528_p2, %p522_p13 }
  0x9d   : > { %v203_v14 = vpop.permute.xlu0 %202 }
  0x9e   : > { %v210_v15 = vsel %vm209_vm1, %v518_v7, %v203_v14 }
  0xa1   : > { %v207_v16 = vpop.permute.xlu0 %206 }
  0xa2   : > { %v212_v17 = vsel %vm211_vm2, %v210_v15, %v207_v16 }
  0xa3   : > { %v213_v18 = vpack.c.bf16 %v212_v17, %v212_v17 }
  0xa5   : > { %465 = vmatmul.mubr.msk.bf16.vlgmr.msra.gmra.mrb[0].mxu0 %vm269_vm3, %v213_v18 }
 0x178   : > { %v307_v39 = vpop.f32.mrb[0].mxu0 }
 0x179   : > { %v308_v40 = vadd.f32 %v433_v37, %v307_v39  ;;  %v466_v41 = vpop.f32.mrb[1].mxu0 }
 0x17a   : > { %v310_v42 = vpop.f32.mrb[2].mxu0 }
 0x17b   : > { %v351_v43 = vadd.f32 %v350_v38, %v308_v40  ;;  %v467_v44 = vpop.f32.mrb[3].mxu0 }
 0x17d   : > { %352 = vst.msk [vmem:[%s188_s10] sm:$0xff] %vm209_vm1, %v351_v43 }
 0x17e   : > { %532 = shalt.err (!%p529_p3)
}
 0x17f   : > { %s533_s28 = scalar_lea.hbm %s696_s14, 128  ;;  %s537_s5 = scalar_lea.hbm %s743_s4, 512 }
 0x180   : > { %p534_p4 = scmp.ne.s32.totalorder %s696_s14, %s533_s28  ;;  %p538_p9 = scmp.lt.u32.totalorder %s696_s14, %s743_s4 }
 0x181   : > { %p539_p10 = scmp.lt.u32.totalorder %s537_s5, %s533_s28  ;;  %p541_p12 = scmp.lt.u32.totalorder %s533_s28, %s696_s14 }
 0x182   : > { %p535_p7 = pnand %p534_p4, %p651_p5 }
 0x183   : > { %p540_p11 = por %p539_p10, %p538_p9 }
 0x184   : > { %p536_p8 = pneg %p535_p7 }
 0x185   : > { %p542_p13 = por %p541_p12, %p540_p11 }
 0x187   : > { %p543_p0 = pnand %p542_p13, %p536_p8 }
 0x189   : > { %546 = shalt.err (!%p543_p0)
}
 0x18a   : > { %468 = dma.vmem_to_hbm [thread:$0]  (%p651_p5), %s698_s11, 128, %s696_s14, %s354_s19  }
 0x18b PF: > { %p474_p1 = scmp.ge.s32.totalorder %s581_s18, 2  ;;  %s379_s8 = sand.u32 1, %s569_s15  }
 0x18c   : > { %s380_s9 = scalar_lea.sflag [#allocation3], %s379_s8 }
 0x18d   : > { %p471_p2 = pnand %p474_p1, %p655_p6 }
 0x18f   : > { %564 = dma.done.wait (!%p471_p2), %s380_s9, 128  }
 0x190   : > { %566 = vsyncadd (!%p471_p2), %s380_s9, 4294967168  ;;  %p14_p3 = scmp.ge.s32.totalorder %s638_s21, 6   ;;  %s746_s15 = smov %s573_s16 }
 0x191   : > { %s747_s16 = smov %s577_s17  ;;  %s748_s17 = smov %s649_s24 }
 0x192   : > { %s749_s18 = smov %s638_s21  ;;  %16 = sbr.rel (!%p14_p3) target bundleno = 3 (0x3), region = 71 }
 0x199   :  { %385 = vsyncpa [#allocation3], 1 }
 0x19a   :  { %387 = vsyncpa [#allocation3 + $0x1], 1 }

</bundles_post_ra>
